<compile_context>
chip_gen: v5e
topology: v5e:2x2
jax: 0.10.0
libtpu: 0.0.40
codegen_flags: <defaults>
</compile_context>

<pallas_src>
import math

import jax
import jax.numpy as jnp
from jax import lax
from jax.experimental import pallas as pl
from jax.experimental.pallas import tpu as pltpu


def timestep_embedder_kernel(t_ref, freqs_ref, w1_ref, b1_ref, w2_ref, b2_ref, o_ref):
    """One grid step processes (TB rows) x (TN output columns).

    t_ref    : (TB, 1)     timesteps (fp32)
    freqs_ref: (1, half)   sinusoidal frequencies (fp32, resident)
    w1_ref   : (F, H)      first Linear weight, pre-transposed (resident)
    b1_ref   : (1, H)      first Linear bias (resident)
    w2_ref   : (H, TN)     column tile of second Linear weight, pre-transposed
    b2_ref   : (1, TN)     column tile of second Linear bias
    o_ref    : (TB, TN)
    """
    half = freqs_ref.shape[-1]
    wdt = w1_ref.dtype

    # ---- sinusoidal timestep embedding (no concat: two half contractions) ----
    args = t_ref[...] * freqs_ref[...]                 # (TB, half) fp32
    cos_e = jnp.cos(args).astype(wdt)                  # .type(mlp[0].weight.dtype)
    sin_e = jnp.sin(args).astype(wdt)

    # ---- Linear(F -> H) + SiLU (fp32 accumulation) ----
    w1 = w1_ref[...]                                   # (F, H), resident
    h = jnp.dot(cos_e, w1[:half], preferred_element_type=jnp.float32)
    h = h + jnp.dot(sin_e, w1[half:], preferred_element_type=jnp.float32)
    h = h + b1_ref[...].astype(jnp.float32)            # (TB, H)
    h = h * jax.nn.sigmoid(h)                          # SiLU (EUP logistic)

    # ---- Linear(H -> H), column tile TN ----
    out = jnp.dot(h.astype(wdt), w2_ref[...], preferred_element_type=jnp.float32)
    out = out + b2_ref[...].astype(jnp.float32)        # (TB, TN)
    o_ref[...] = out.astype(o_ref.dtype)


def _round_up(x, m):
    return (x + m - 1) // m * m


def prepare_timestep_embedder_params(params, compute_dtype=jnp.float32,
                                     frequency_embedding_size=256,
                                     max_period=10000.0):
    """One-time (load-time) prep: PyTorch (out,in) -> (in,out) transpose, dtype cast,
    and the sinusoidal frequency row.  Keep this OUT of the per-call path."""
    F = frequency_embedding_size
    # TODO(synk): odd frequency_embedding_size (dim % 2) appends a zero column; not handled.
    assert F % 2 == 0, "frequency_embedding_size must be even"
    half = F // 2
    freqs = jnp.exp(
        -math.log(max_period) * jnp.arange(half, dtype=jnp.float32) / half
    )[None, :]                                                    # (1, half) fp32
    return {
        "w1": jnp.asarray(params["w1"]).T.astype(compute_dtype),  # (F, H)
        "b1": jnp.asarray(params["b1"])[None, :].astype(compute_dtype),
        "w2": jnp.asarray(params["w2"]).T.astype(compute_dtype),  # (H, H)
        "b2": jnp.asarray(params["b2"])[None, :].astype(compute_dtype),
        "freqs": freqs,
    }


def timestep_embedder(t, prepped):
    """t: (B,) timesteps.  prepped: output of prepare_timestep_embedder_params."""
    w1, b1 = prepped["w1"], prepped["b1"]
    w2, b2 = prepped["w2"], prepped["b2"]
    freqs = prepped["freqs"]
    F, H = w1.shape
    half = freqs.shape[-1]

    B = t.shape[0]
    # Minimal row tile (kernel is weight-DMA bound; extra rows are wasted work).
    TB = min(256, _round_up(max(B, 1), 8))
    pB = _round_up(B, TB)
    nB = pB // TB
    # Output-column tile of the second matmul (1408 = 11 x 128 in the real model).
    TN = 128 if H % 128 == 0 else H
    nN = H // TN

    t_pad = jnp.zeros((pB, 1), jnp.float32).at[:B, 0].set(t.astype(jnp.float32))

    out = pl.pallas_call(
        timestep_embedder_kernel,
        out_shape=jax.ShapeDtypeStruct((pB, H), w1.dtype),
        grid_spec=pltpu.PrefetchScalarGridSpec(
            num_scalar_prefetch=0,
            grid=(nN, nB),   # parallel (column-split across TCs), then rows
            in_specs=[
                pl.BlockSpec((TB, 1), lambda n, i: (i, 0)),         # timesteps
                pl.BlockSpec((1, half), lambda n, i: (0, 0),        # freqs (resident)
                             pipeline_mode=pl.Buffered(1)),
                pl.BlockSpec((F, H), lambda n, i: (0, 0),           # W1 (resident)
                             pipeline_mode=pl.Buffered(1)),
                pl.BlockSpec((1, H), lambda n, i: (0, 0),           # b1 (resident)
                             pipeline_mode=pl.Buffered(1)),
                pl.BlockSpec((H, TN), lambda n, i: (0, n)),         # W2 column tile
                pl.BlockSpec((1, TN), lambda n, i: (0, n)),         # b2 column tile
            ],
            out_specs=pl.BlockSpec((TB, TN), lambda n, i: (i, n)),
        ),
        compiler_params=pltpu.CompilerParams(
            dimension_semantics=("parallel", "arbitrary")),
    )(t_pad, freqs, w1, b1, w2, b2)
    return out[:B]


def reference_forward(t, params, frequency_embedding_size=256, max_period=10000.0):
    """Pure-JAX fp32 reference matching the PyTorch forward exactly."""
    F = frequency_embedding_size
    half = F // 2
    freqs = jnp.exp(-math.log(max_period) * jnp.arange(half, dtype=jnp.float32) / half)
    args = t.astype(jnp.float32)[:, None] * freqs[None]
    emb = jnp.concatenate([jnp.cos(args), jnp.sin(args)], axis=-1)   # (B, F)
    emb = emb.astype(params["w1"].dtype)
    h = jnp.dot(emb, params["w1"].T, precision=lax.Precision.HIGHEST) + params["b1"]
    h = h * jax.nn.sigmoid(h)
    out = jnp.dot(h, params["w2"].T, precision=lax.Precision.HIGHEST) + params["b2"]
    return out


if __name__ == "__main__":
    # Small shapes consistent with the module: TimestepEmbedder(hidden_size=H,
    # frequency_embedding_size=F); the real model uses H=1408, F=256 — shrink H for the test
    # (H=256 -> two output-column tiles, exercising the N grid axis).
    B = 2
    F = 256          # frequency_embedding_size
    H = 256          # hidden_size (multiple of 128 -> lane-dense tiles)

    key = jax.random.PRNGKey(0)
    k_t, k_w1, k_b1, k_w2, k_b2 = jax.random.split(key, 5)

    t = jax.random.uniform(k_t, (B,), minval=0.0, maxval=1000.0, dtype=jnp.float32)

    params = {
        # PyTorch Linear weights: (out_features, in_features)
        "w1": jax.random.normal(k_w1, (H, F), dtype=jnp.float32) * 0.02,
        "b1": jax.random.normal(k_b1, (H,), dtype=jnp.float32) * 0.02,
        "w2": jax.random.normal(k_w2, (H, H), dtype=jnp.float32) * 0.02,
        "b2": jax.random.normal(k_b2, (H,), dtype=jnp.float32) * 0.02,
    }

    ref = reference_forward(t, params, frequency_embedding_size=F)

    # --- fp32 weights: bit-for-bit-ish parity with the fp32 reference ---
    prepped_f32 = prepare_timestep_embedder_params(
        params, compute_dtype=jnp.float32, frequency_embedding_size=F)
    out_f32 = jax.block_until_ready(timestep_embedder(t, prepped_f32))
    assert out_f32.shape == (B, H), out_f32.shape
    assert jnp.allclose(out_f32, ref, atol=1e-4, rtol=1e-4), float(
        jnp.max(jnp.abs(out_f32 - ref)))

    # --- bf16 weights (bandwidth-optimal path): fp32 accumulation, relaxed tolerance ---
    prepped_bf16 = prepare_timestep_embedder_params(
        params, compute_dtype=jnp.bfloat16, frequency_embedding_size=F)
    out_bf16 = jax.block_until_ready(timestep_embedder(t, prepped_bf16))
    assert out_bf16.shape == (B, H), out_bf16.shape
    assert jnp.allclose(out_bf16.astype(jnp.float32), ref, atol=1e-2, rtol=1e-2), float(
        jnp.max(jnp.abs(out_bf16.astype(jnp.float32) - ref)))

    print("KERNEL_OK")
</pallas_src>

<mosaic_0001>
module attributes {stable_mosaic.version = 11 : i64} {
  func.func @timestep_embedder_kernel(%arg0: i32, %arg1: i32, %arg2: memref<8x1xf32, #tpu.memory_space<vmem>>, %arg3: memref<1x128xf32, #tpu.memory_space<vmem>>, %arg4: memref<256x256xf32, #tpu.memory_space<vmem>>, %arg5: memref<1x256xf32, #tpu.memory_space<vmem>>, %arg6: memref<256x128xf32, #tpu.memory_space<vmem>>, %arg7: memref<1x128xf32, #tpu.memory_space<vmem>>, %arg8: memref<8x128xf32, #tpu.memory_space<vmem>>) attributes {dimension_semantics = [#tpu.dimension_semantics<parallel>, #tpu.dimension_semantics<arbitrary>], iteration_bounds = array<i64: 2, 1>, scalar_prefetch = 0 : i64, scratch_operands = 0 : i64, tpu.core_type = #tpu.core_type<tc>, window_params = [{transform_indices = @transform_0, window_bounds = array<i64: 8, 1>}, {pipeline_mode = #tpu.pipeline_mode<synchronous>, transform_indices = @transform_1, window_bounds = array<i64: 1, 128>}, {pipeline_mode = #tpu.pipeline_mode<synchronous>, transform_indices = @transform_2, window_bounds = array<i64: 256, 256>}, {pipeline_mode = #tpu.pipeline_mode<synchronous>, transform_indices = @transform_3, window_bounds = array<i64: 1, 256>}, {transform_indices = @transform_4, window_bounds = array<i64: 256, 128>}, {transform_indices = @transform_5, window_bounds = array<i64: 1, 128>}, {transform_indices = @transform_6, window_bounds = array<i64: 8, 128>}]} {
    %c0 = arith.constant 0 : index
    %c0_0 = arith.constant 0 : index
    %0 = vector.load %arg2[%c0, %c0_0] : memref<8x1xf32, #tpu.memory_space<vmem>>, vector<8x1xf32>
    %c0_1 = arith.constant 0 : index
    %c0_2 = arith.constant 0 : index
    %1 = vector.load %arg3[%c0_1, %c0_2] : memref<1x128xf32, #tpu.memory_space<vmem>>, vector<1x128xf32>
    %2 = vector.broadcast %0 : vector<8x1xf32> to vector<8x128xf32>
    %3 = vector.broadcast %1 : vector<1x128xf32> to vector<8x128xf32>
    %4 = arith.mulf %2, %3 : vector<8x128xf32>
    %5 = math.cos %4 : vector<8x128xf32>
    %6 = math.sin %4 : vector<8x128xf32>
    %c0_3 = arith.constant 0 : index
    %c0_4 = arith.constant 0 : index
    %7 = vector.load %arg4[%c0_3, %c0_4] : memref<256x256xf32, #tpu.memory_space<vmem>>, vector<256x256xf32>
    %8 = vector.extract_strided_slice %7 {offsets = [0, 0], sizes = [128, 256], strides = [1, 1]} : vector<256x256xf32> to vector<128x256xf32>
    %cst = arith.constant dense<0.000000e+00> : vector<8x256xf32>
    %9 = tpu.matmul %5, %8, %cst {dimension_numbers = #tpu.dot_dimension_numbers<[1], [0], [0], [1], [0, 0, 1, 1], [], []>} : vector<8x128xf32>, vector<128x256xf32>, vector<8x256xf32> -> vector<8x256xf32>
    %10 = vector.extract_strided_slice %7 {offsets = [128, 0], sizes = [128, 256], strides = [1, 1]} : vector<256x256xf32> to vector<128x256xf32>
    %cst_5 = arith.constant dense<0.000000e+00> : vector<8x256xf32>
    %11 = tpu.matmul %6, %10, %cst_5 {dimension_numbers = #tpu.dot_dimension_numbers<[1], [0], [0], [1], [0, 0, 1, 1], [], []>} : vector<8x128xf32>, vector<128x256xf32>, vector<8x256xf32> -> vector<8x256xf32>
    %12 = arith.addf %9, %11 : vector<8x256xf32>
    %c0_6 = arith.constant 0 : index
    %c0_7 = arith.constant 0 : index
    %13 = vector.load %arg5[%c0_6, %c0_7] : memref<1x256xf32, #tpu.memory_space<vmem>>, vector<1x256xf32>
    %14 = vector.broadcast %13 : vector<1x256xf32> to vector<8x256xf32>
    %15 = arith.addf %12, %14 : vector<8x256xf32>
    %16 = arith.negf %15 : vector<8x256xf32>
    %17 = math.exp %16 : vector<8x256xf32>
    %cst_8 = arith.constant 1.000000e+00 : f32
    %18 = vector.broadcast %cst_8 : f32 to vector<8x256xf32>
    %19 = arith.addf %18, %17 : vector<8x256xf32>
    %20 = arith.divf %18, %19 : vector<8x256xf32>
    %21 = arith.mulf %15, %20 : vector<8x256xf32>
    %c0_9 = arith.constant 0 : index
    %c0_10 = arith.constant 0 : index
    %22 = vector.load %arg6[%c0_9, %c0_10] : memref<256x128xf32, #tpu.memory_space<vmem>>, vector<256x128xf32>
    %cst_11 = arith.constant dense<0.000000e+00> : vector<8x128xf32>
    %23 = tpu.matmul %21, %22, %cst_11 {dimension_numbers = #tpu.dot_dimension_numbers<[1], [0], [0], [1], [0, 0, 1, 1], [], []>} : vector<8x256xf32>, vector<256x128xf32>, vector<8x128xf32> -> vector<8x128xf32>
    %c0_12 = arith.constant 0 : index
    %c0_13 = arith.constant 0 : index
    %24 = vector.load %arg7[%c0_12, %c0_13] : memref<1x128xf32, #tpu.memory_space<vmem>>, vector<1x128xf32>
    %25 = vector.broadcast %24 : vector<1x128xf32> to vector<8x128xf32>
    %26 = arith.addf %23, %25 : vector<8x128xf32>
    %c0_14 = arith.constant 0 : index
    %c0_15 = arith.constant 0 : index
    %27 = vector.load %arg8[%c0_14, %c0_15] : memref<8x128xf32, #tpu.memory_space<vmem>>, vector<8x128xf32>
    tpu.vector_store %arg8[%c0_14, %c0_15], %26 {strides = array<i32>} : memref<8x128xf32, #tpu.memory_space<vmem>>, vector<8x128xf32>,
    return
  }
  func.func @transform_0(%arg0: i32, %arg1: i32) -> (i32, i32) {
    %c0_i32 = arith.constant 0 : i32
    %c0_i32_0 = arith.constant 0 : i32
    return %arg1, %c0_i32 : i32, i32
  }
  func.func @transform_1(%arg0: i32, %arg1: i32) -> (i32, i32) {
    %c0_i32 = arith.constant 0 : i32
    %c0_i32_0 = arith.constant 0 : i32
    %c0_i32_1 = arith.constant 0 : i32
    return %c0_i32, %c0_i32_0 : i32, i32
  }
  func.func @transform_2(%arg0: i32, %arg1: i32) -> (i32, i32) {
    %c0_i32 = arith.constant 0 : i32
    %c0_i32_0 = arith.constant 0 : i32
    %c0_i32_1 = arith.constant 0 : i32
    return %c0_i32, %c0_i32_0 : i32, i32
  }
  func.func @transform_3(%arg0: i32, %arg1: i32) -> (i32, i32) {
    %c0_i32 = arith.constant 0 : i32
    %c0_i32_0 = arith.constant 0 : i32
    %c0_i32_1 = arith.constant 0 : i32
    return %c0_i32, %c0_i32_0 : i32, i32
  }
  func.func @transform_4(%arg0: i32, %arg1: i32) -> (i32, i32) {
    %c0_i32 = arith.constant 0 : i32
    %c0_i32_0 = arith.constant 0 : i32
    return %c0_i32, %arg0 : i32, i32
  }
  func.func @transform_5(%arg0: i32, %arg1: i32) -> (i32, i32) {
    %c0_i32 = arith.constant 0 : i32
    %c0_i32_0 = arith.constant 0 : i32
    return %c0_i32, %arg0 : i32, i32
  }
  func.func @transform_6(%arg0: i32, %arg1: i32) -> (i32, i32) {
    %c0_i32 = arith.constant 0 : i32
    return %arg1, %arg0 : i32, i32
  }
}

</mosaic_0001>

<bundles_post_ra>
// kernel: tpu_custom_call.1
= control target key start
LH: loop header
LB: loop body
LE: loop exit
PB: predicated region body
PF: predicated region fallthrough
CT: control target
= control target key end

     0   :  { %s1640_s0 = inlined_call_operand.vmem [shape: f32[8,1], index: 0, kind: input, shape index: {}]   ;;  %s1641_s1 = inlined_call_operand.vmem [shape: f32[1,128], index: 1, kind: input, shape index: {}]   ;;  %s1642_s2 = inlined_call_operand.hbm [shape: f32[256,256], index: 2, kind: input, shape index: {}]   ;;  %s1643_s3 = inlined_call_operand.vmem [shape: f32[1,256], index: 3, kind: input, shape index: {}]   ;;  %s1644_s4 = inlined_call_operand.hbm [shape: f32[256,256], index: 4, kind: input, shape index: {}]   ;;  %s1645_s5 = inlined_call_operand.vmem [shape: f32[1,256], index: 5, kind: input, shape index: {}]   ;;  %s1646_s6 = inlined_call_operand.hbm [shape: f32[8,256], index: 6, kind: output, shape index: {}]  }
   0x1   :  { %1652 = sst [smem:[#allocation14_spill]] %s1642_s2 }
   0x2   :  { %11 = vsyncpa [#allocation3], 0 }
   0x3   :  { %12 = vsyncpa [#allocation6], 0 }
   0x4   :  { %14 = vsyncpa [#allocation6 + $0x1], 0 }
   0x5   :  { %15 = vsyncpa [#allocation4], 0 }
   0x6   :  { %17 = vsyncpa [#allocation4 + $0x1], 0  ;;  %s1370_s21 = smov 0   ;;  %s1372_s22 = smov 0  }
   0x7   :  { %s1374_s23 = smov 0   ;;  %s1376_s24 = smov 0  }
   0x8   :  { %s1378_s25 = smov 0   ;;  %s1380_s26 = smov 0  }
   0x9 LB: > { %1653 = sst [smem:[#allocation11_spill]] %s1321_s26  ;;  %s1056_s27 = sadd.s32 4294967295, %s1321_s26   ;;  %s1321_s26 = sphi %s1380_s26, %s23_s26   ;;  %s1317_s25 = sphi %s1378_s25, %s1672_s25   ;;  %s1313_s24 = sphi %s1376_s24, %s1671_s24   ;;  %s1309_s23 = sphi %s1374_s23, %s1670_s23   ;;  %s1305_s22 = sphi %s1372_s22, %s1669_s22   ;;  %s1301_s21 = sphi %s1370_s21, %s1668_s21  }
   0xa   : > { %s1057_s28 = sadd.s32 4294967294, %s1321_s26   ;;  %p144_p0 = scmp.ne.s32.totalorder %s1305_s22, %s1301_s21 }
   0xb   : > { %p1404_p1 = scmp.eq.s32.totalorder %s1056_s27, 0  ;;  %p1408_p2 = scmp.eq.s32.totalorder %s1056_s27, 1 }
   0xc   : > { %p202_p3 = scmp.eq.s32.totalorder %s1057_s28, 1  ;;  %p1058_p5 = scmp.ge.s32.totalorder %s1321_s26, 1 }
   0xd   : > { %p1414_p4 = por %p1404_p1, %p144_p0  ;;  %p209_p7 = scmp.lt.s32.totalorder %s1321_s26, 3 }
   0xe   : > { %p1419_p6 = por %p202_p3, %p144_p0  ;;  %s1659_s2 = sld [smem:[#allocation14_spill]] }
   0xf   : > { %p1427_p8 = pnand %p1058_p5, %p209_p7  ;;  %s1323_s13 = smov [#allocation2]  }
  0x10   : > { %s1657_s8 = scalar_select %p1419_p6, 1, 0 }
  0x11   : > { %p1088_p9 = pneg %p1427_p8  ;;  %s232_s14 = sshll.u32 %s1323_s13, 4  ;;  %s233_s14 = int_to_ptr.vmem [resolvable:$true] %s232_s14 }
  0x12   : > { %1658 = sst [smem:[#allocation12_spill]] %s1657_s8  ;;  %p1061_p11 = scmp.ge.s32.totalorder %s1321_s26, 2 }
  0x13   : > { %p1089_p10 = pnand %p1088_p9, %p1404_p1  ;;  %s1647_s15 = smov 256  }
  0x14   : > { %s230_s11 = sshll.u32 %s1659_s2, 4  ;;  %s1325_s16 = smov 16   ;;  %s231_s11 = int_to_ptr.hbm [resolvable:$true] %s230_s11 }
  0x15   : > { %1091 = dma.hbm_to_vmem [thread:$0]  (!%p1089_p10), %s231_s11, 8192, %s233_s14, [#allocation3], %s1647_s15, %s1647_s15, %s1325_s16  }
  0x16   : > { %s35_s17 = sadd.s32 1, %s1317_s25  ;;  %s131_s18 = sadd.s32 1, %s1309_s23 }
  0x17   : > { %p37_p12 = scmp.ge.s32.totalorder %s35_s17, 2  ;;  %p138_p13 = scmp.ne.s32.totalorder %s1309_s23, %s1305_s22 }
  0x18   : > { %p139_p0 = scmp.eq.s32.totalorder %s1321_s26, 0  ;;  %p1101_p7 = scmp.lt.s32.totalorder %s1321_s26, 2 }
  0x19   : > { %s1674_s17 = smov (%p37_p12, %s35_s17), 0  ;;  %p1451_p5 = por %p1408_p2, %p138_p13 }
  0x1a   : > { %1661 = sst [smem:[#allocation13_spill]] %s1674_s17  ;;  %p1445_p3 = por %p139_p0, %p138_p13 }
  0x1b   : > { %s128_s27 = ssub.s32 %s1317_s25, %s1674_s17  ;;  %s249_s28 = sand.u32 1, %s1309_s23  }
  0x1c   : > { %p129_p9 = scmp.eq.s32.totalorder %s128_s27, 0  ;;  %s1062_s9 = sshll.u32 %s249_s28, 8 }
  0x1d   : > { %s1063_s11 = sshll.u32 %s1317_s25, 3  ;;  %s253_s15 = scalar_lea.vmem [#allocation5], %s1062_s9 }
  0x1e   : > { %s1460_s10 = scalar_select %p129_p9, %s1309_s23, %s131_s18  }
  0x1f   : > { %s257_s16 = scalar_lea.hbm %s1644_s4, %s1063_s11  ;;  %s260_s2 = sshll.u32 %s253_s15, 4  ;;  %s261_s2 = int_to_ptr.vmem [resolvable:$true] %s260_s2 }
  0x20   : > { %s258_s30 = sshll.u32 %s257_s16, 4  ;;  %p1093_p2 = pnand %p1101_p7, %p1445_p3  ;;  %s259_s30 = int_to_ptr.hbm [resolvable:$true] %s258_s30 }
  0x21   : > { %s250_s8 = scalar_lea.sflag [#allocation6], %s249_s28  ;;  %s1326_s17 = smov 128  }
  0x22   : > { %s1327_s26 = smov 8   ;;  %s1664_s27 = smov 256  }
  0x23   : > { %1095 = dma.hbm_to_vmem [thread:$0]  (!%p1093_p2), %s259_s30, 4096, %s261_s2, %s250_s8, %s1664_s27, %s1326_s17, %s1327_s26  }
  0x24   : > { %278 = sbr.rel (%p1427_p8) target bundleno = 561 (0x231), region = 44 }
  0x29   : > { %1288 = dma.done.wait (%p1404_p1), [#allocation3], 8192  }
  0x2a   : > { %1290 = vsyncadd (%p1404_p1), [#allocation3], 4294959104  ;;  %s1476_s15 = sand.u32 1, %s1305_s22  }
  0x2b   : > { %s1066_s18 = sshll.u32 %s1476_s15, 8  ;;  %s286_s19 = scalar_lea.sflag [#allocation6], %s1476_s15 }
  0x2c   : > { %s1480_s28 = scalar_lea.vmem [#allocation5], %s1066_s18 }
  0x2d   : > { %1292 = dma.done.wait (%p1414_p4), %s286_s19, 4096  }
  0x2e   : > { %1294 = vsyncadd (%p1414_p4), %s286_s19, 4294963200  ;;  %v1328_v0 = vmov 0   ;;  %v333_v1 = vld [vmem:[%s1640_s0] sm:$0xff]  ;;  %v715_v2 = vld [vmem:[#allocation2 + $0x1f0] sm:$0xff]  ;;  %p330_p1 = scmp.lt.s32.totalorder %s1313_s24, 1  ;;  %s1067_s14 = sshll.u32 %s1476_s15, 3 }
  0x2f   : > { %1164 = vset.pattern.permute.xlu0 %v1328_v0  ;;  %v716_v3 = vld [vmem:[#allocation2 + $0x1f8] sm:$0xff]  ;;  %v683_v4 = vld [vmem:[#allocation2 + $0xf0] sm:$0xff]  ;;  %717 = vmatpush.msra.mxu0 %v715_v2  ;;  %v713_v6 = vld [vmem:[#allocation2 + $0x1e0] sm:$0xff]  ;;  %s1077_s16 = sshll.u32 %s1313_s24, 3  ;;  %s325_s2 = scalar_lea.vmem [#allocation7], %s1067_s14 }
  0x30   : > { %337 = vperm.xlu0 %1164, %v333_v1   ;;  %737 = vmatpush.msra.mxu1 %v716_v3  ;;  %v684_v5 = vld [vmem:[#allocation2 + $0xf8] sm:$0xff]  ;;  %v714_v7 = vld [vmem:[#allocation2 + $0x1e8] sm:$0xff]  ;;  %v681_v8 = vld [vmem:[#allocation2 + $0xe0] sm:$0xff]  ;;  %s1555_s8 = scalar_select %p330_p1, %s1313_s24, 1 }
  0x31   : > { %757 = vmatpush.msra.mxu2 %v683_v4  ;;  %777 = vmatpush.msra.mxu3 %v684_v5  ;;  %v682_v9 = vld [vmem:[#allocation2 + $0xe8] sm:$0xff]  ;;  %v711_v10 = vld [vmem:[#allocation2 + $0x1d0] sm:$0xff]  ;;  %v712_v11 = vld [vmem:[#allocation2 + $0x1d8] sm:$0xff]  ;;  %s937_s26 = sshll.u32 %s325_s2, 4  ;;  %s923_s24 = scalar_lea.sflag [#allocation4], %s1476_s15  ;;  %s938_s26 = int_to_ptr.vmem [resolvable:$true] %s937_s26 }
  0x32   : > { %718 = vmatpush.msra.mxu0 %v713_v6  ;;  %738 = vmatpush.msra.mxu1 %v714_v7  ;;  %v679_v12 = vld [vmem:[#allocation2 + $0xd0] sm:$0xff]  ;;  %v680_v13 = vld [vmem:[#allocation2 + $0xd8] sm:$0xff]  ;;  %v709_v14 = vld [vmem:[#allocation2 + $0x1c0] sm:$0xff]  ;;  %v1329_v7 = vmov 2102212464   ;;  %s332_s9 = scalar_lea.vmem %s1645_s5, %s1555_s8 }
  0x33   : > { %758 = vmatpush.msra.mxu2 %v681_v8  ;;  %778 = vmatpush.msra.mxu3 %v682_v9  ;;  %v710_v15 = vld [vmem:[#allocation2 + $0x1c8] sm:$0xff]  ;;  %v677_v16 = vld [vmem:[#allocation2 + $0xc0] sm:$0xff]  ;;  %v707_v18 = vld [vmem:[#allocation2 + $0x1b0] sm:$0xff] }
  0x34   : > { %719 = vmatpush.msra.mxu0 %v711_v10  ;;  %739 = vmatpush.msra.mxu1 %v712_v11  ;;  %v678_v17 = vld [vmem:[#allocation2 + $0xc8] sm:$0xff]  ;;  %v708_v19 = vld [vmem:[#allocation2 + $0x1b8] sm:$0xff]  ;;  %v675_v20 = vld [vmem:[#allocation2 + $0xb0] sm:$0xff] }
  0x35   : > { %759 = vmatpush.msra.mxu2 %v679_v12  ;;  %779 = vmatpush.msra.mxu3 %v680_v13  ;;  %v676_v21 = vld [vmem:[#allocation2 + $0xb8] sm:$0xff]  ;;  %v1165_v22 = vld [vmem:[%s1641_s1] ss:$0 sm:$0xff]  ;;  %v706_v24 = vld [vmem:[#allocation2 + $0x1a8] sm:$0xff]  ;;  %v1330_v13 = vmov 920167782  }
  0x36   : > { %720 = vmatpush.msra.mxu0 %v709_v14  ;;  %740 = vmatpush.msra.mxu1 %v710_v15  ;;  %v705_v23 = vld [vmem:[#allocation2 + $0x1a0] sm:$0xff]  ;;  %v674_v26 = vld [vmem:[#allocation2 + $0xa8] sm:$0xff]  ;;  %v703_v27 = vld [vmem:[#allocation2 + $0x190] sm:$0xff] }
  0x37   : > { %760 = vmatpush.msra.mxu2 %v677_v16  ;;  %780 = vmatpush.msra.mxu3 %v678_v17  ;;  %v673_v25 = vld [vmem:[#allocation2 + $0xa0] sm:$0xff]  ;;  %v704_v28 = vld [vmem:[#allocation2 + $0x198] sm:$0xff]  ;;  %v671_v30 = vld [vmem:[#allocation2 + $0x90] sm:$0xff]  ;;  %v1331_v17 = vmov 683565275  }
  0x38   : > { %721 = vmatpush.msra.mxu0 %v707_v18  ;;  %741 = vmatpush.msra.mxu1 %v708_v19  ;;  %v672_v31 = vld [vmem:[#allocation2 + $0x98] sm:$0xff]  ;;  %v701_v33 = vld [vmem:[#allocation2 + $0x180] sm:$0xff]  ;;  %v702_v34 = vld [vmem:[#allocation2 + $0x188] sm:$0xff]  ;;  %v1332_v19 = vmov 2475754826  }
  0x39   : > { %761 = vmatpush.msra.mxu2 %v675_v20  ;;  %781 = vmatpush.msra.mxu3 %v676_v21  ;;  %v669_v35 = vld [vmem:[#allocation2 + $0x80] sm:$0xff]  ;;  %v670_v36 = vld [vmem:[#allocation2 + $0x88] sm:$0xff]  ;;  %v699_v38 = vld [vmem:[#allocation2 + $0x170] sm:$0xff] }
  0x3a   : > { %722 = vmatpush.msra.mxu0 %v705_v23  ;;  %742 = vmatpush.msra.mxu1 %v706_v24  ;;  %v700_v39 = vld [vmem:[#allocation2 + $0x178] sm:$0xff]  ;;  %v667_v40 = vld [vmem:[#allocation2 + $0x70] sm:$0xff]  ;;  %v697_v43 = vld [vmem:[#allocation2 + $0x160] sm:$0xff] }
  0x3b   : > { %762 = vmatpush.msra.mxu2 %v673_v25  ;;  %782 = vmatpush.msra.mxu3 %v674_v26  ;;  %v668_v41 = vld [vmem:[#allocation2 + $0x78] sm:$0xff]  ;;  %v698_v44 = vld [vmem:[#allocation2 + $0x168] sm:$0xff]  ;;  %v665_v45 = vld [vmem:[#allocation2 + $0x60] sm:$0xff]  ;;  %v1334_v26 = vmov 2131351028  }
  0x3c   : > { %723 = vmatpush.msra.mxu0 %v703_v27  ;;  %743 = vmatpush.msra.mxu1 %v704_v28  ;;  %v666_v46 = vld [vmem:[#allocation2 + $0x68] sm:$0xff]  ;;  %v695_v48 = vld [vmem:[#allocation2 + $0x150] sm:$0xff]  ;;  %v696_v49 = vld [vmem:[#allocation2 + $0x158] sm:$0xff] }
  0x3d   : > { %763 = vmatpush.msra.mxu2 %v671_v30  ;;  %783 = vmatpush.msra.mxu3 %v672_v31  ;;  %v663_v51 = vld [vmem:[#allocation2 + $0x50] sm:$0xff]  ;;  %v664_v52 = vld [vmem:[#allocation2 + $0x58] sm:$0xff]  ;;  %v693_v54 = vld [vmem:[#allocation2 + $0x140] sm:$0xff] }
  0x3e   : > { %724 = vmatpush.msra.mxu0 %v701_v33  ;;  %744 = vmatpush.msra.mxu1 %v702_v34  ;;  %v694_v55 = vld [vmem:[#allocation2 + $0x148] sm:$0xff]  ;;  %v661_v56 = vld [vmem:[#allocation2 + $0x40] sm:$0xff]  ;;  %v691_v58 = vld [vmem:[#allocation2 + $0x130] sm:$0xff] }
  0x3f   : > { %764 = vmatpush.msra.mxu2 %v669_v35  ;;  %784 = vmatpush.msra.mxu3 %v670_v36  ;;  %v662_v57 = vld [vmem:[#allocation2 + $0x48] sm:$0xff]  ;;  %v692_v59 = vld [vmem:[#allocation2 + $0x138] sm:$0xff]  ;;  %v659_v62 = vld [vmem:[#allocation2 + $0x30] sm:$0xff] }
  0x40   : > { %725 = vmatpush.msra.mxu0 %v699_v38  ;;  %745 = vmatpush.msra.mxu1 %v700_v39  ;;  %v660_v63 = vld [vmem:[#allocation2 + $0x38] sm:$0xff]  ;;  %v689_v2 = vld [vmem:[#allocation2 + $0x120] sm:$0xff]  ;;  %v690_v3 = vld [vmem:[#allocation2 + $0x128] sm:$0xff] }
  0x41   : > { %765 = vmatpush.msra.mxu2 %v667_v40  ;;  %785 = vmatpush.msra.mxu3 %v668_v41  ;;  %v657_v4 = vld [vmem:[#allocation2 + $0x20] sm:$0xff]  ;;  %v658_v5 = vld [vmem:[#allocation2 + $0x28] sm:$0xff]  ;;  %v687_v9 = vld [vmem:[#allocation2 + $0x110] sm:$0xff] }
  0x42   : > { %726 = vmatpush.msra.mxu0 %v697_v43  ;;  %746 = vmatpush.msra.mxu1 %v698_v44  ;;  %v688_v10 = vld [vmem:[#allocation2 + $0x118] sm:$0xff]  ;;  %v655_v15 = vld [vmem:[#allocation2 + $0x10] sm:$0xff]  ;;  %v685_v24 = vld [vmem:[#allocation2 + $0x100] sm:$0xff] }
  0x43   : > { %766 = vmatpush.msra.mxu2 %v665_v45  ;;  %786 = vmatpush.msra.mxu3 %v666_v46  ;;  %v656_v16 = vld [vmem:[#allocation2 + $0x18] sm:$0xff]  ;;  %v686_v25 = vld [vmem:[#allocation2 + $0x108] sm:$0xff]  ;;  %v653_v28 = vld [vmem:[#allocation2] sm:$0xff] }
  0x44   : > { %727 = vmatpush.msra.mxu0 %v695_v48  ;;  %747 = vmatpush.msra.mxu1 %v696_v49 }
  0x45   : > { %767 = vmatpush.msra.mxu2 %v663_v51  ;;  %787 = vmatpush.msra.mxu3 %v664_v52 }
  0x46   : > { %728 = vmatpush.msra.mxu0 %v693_v54  ;;  %748 = vmatpush.msra.mxu1 %v694_v55 }
  0x47   : > { %768 = vmatpush.msra.mxu2 %v661_v56  ;;  %788 = vmatpush.msra.mxu3 %v662_v57 }
  0x48   : > { %729 = vmatpush.msra.mxu0 %v691_v58  ;;  %749 = vmatpush.msra.mxu1 %v692_v59 }
  0x49   : > { %769 = vmatpush.msra.mxu2 %v659_v62  ;;  %789 = vmatpush.msra.mxu3 %v660_v63 }
  0x4a   : > { %730 = vmatpush.msra.mxu0 %v689_v2  ;;  %750 = vmatpush.msra.mxu1 %v690_v3 }
  0x4b   : > { %770 = vmatpush.msra.mxu2 %v657_v4  ;;  %790 = vmatpush.msra.mxu3 %v658_v5 }
  0x4c   : > { %731 = vmatpush.msra.mxu0 %v687_v9  ;;  %751 = vmatpush.msra.mxu1 %v688_v10 }
  0x4d   : > { %771 = vmatpush.msra.mxu2 %v655_v15  ;;  %791 = vmatpush.msra.mxu3 %v656_v16 }
  0x4e   : > { %732 = vmatpush.msra.mxu0 %v685_v24  ;;  %752 = vmatpush.msra.mxu1 %v686_v25 }
  0x4f   : > { %772 = vmatpush.msra.mxu2 %v653_v28 }
  0xa2   : > { %v338_v29 = vpop.permute.xlu0 %337 }
  0xa3   : > { %v1493_v32 = vmul.f32 %v1165_v22, %v338_v29  ;;  %v1333_v22 = vmov 1326507024   ;;  %v654_v29 = vld [vmem:[#allocation2 + $0x8] sm:$0xff] }
  0xa4   : > { %792 = vmatpush.msra.mxu3 %v654_v29 }
  0xa5   : > { %v347_v37 = vand.u32 2139095040, %v1493_v32  ;;  %v344_v50 = vand.u32 2147483647, %v1493_v32  ;;  %vm346_vm12 = vcmp.lt.s32.totalorder %v1493_v32, 0 }
  0xa7   : > { %v348_v42 = vshrl.u32 %v347_v37, 23  ;;  %v351_v60 = vand.u32 8388607, %v344_v50  ;;  %vm345_vm13 = vcmp.le.f32.partialorder %v344_v50, 0.7853982 }
  0xa9   : > { %v1068_v47 = vadd.s32 4294967169, %v348_v42  ;;  %v352_v11 = vor.u32 8388608, %v351_v60 }
  0xab   : > { %v354_v53 = vadd.s32 1, %v1068_v47  ;;  %v1509_v36 = vshll.u32 %v352_v11, 8 }
  0xad   : > { %vm355_vm0 = vcmp.gt.s32.totalorder %v354_v53, 0  ;;  %v393_v47 = vand.u32 65535, %v1509_v36  ;;  %v394_v49 = vshrl.u32 %v1509_v36, 16 }
  0xae   : > { %v356_v61 = vsel %vm355_vm0, %v354_v53, 0 }
  0xaf   : > { %v358_v1 = vand.u32 31, %v356_v61  ;;  %v1501_v12 = vshrl.u32 %v356_v61, 5 }
  0xb1   : > { %v1499_v6 = vsub.s32 32, %v358_v1  ;;  %v370_v8 = vshll.u32 %v1329_v7, %v358_v1  ;;  %v373_v14 = vshll.u32 %v1330_v13, %v358_v1  ;;  %v361_v18 = vshll.u32 %v1331_v17, %v358_v1 }
  0xb2   : > { %v364_v20 = vshll.u32 %v1332_v19, %v358_v1  ;;  %v367_v27 = vshll.u32 %v1334_v26, %v358_v1  ;;  %vm379_vm1 = vcmp.lt.s32.totalorder %v1501_v12, 4  ;;  %vm376_vm2 = vcmp.lt.s32.totalorder %v1501_v12, 1 }
  0xb3   : > { %v371_v21 = vshrl.u32 %v1330_v13, %v1499_v6  ;;  %v374_v23 = vshrl.u32 %v1333_v22, %v1499_v6  ;;  %v362_v30 = vshrl.u32 %v1332_v19, %v1499_v6  ;;  %v365_v31 = vshrl.u32 %v1334_v26, %v1499_v6 }
  0xb4   : > { %v368_v33 = vshrl.u32 %v1329_v7, %v1499_v6  ;;  %vm378_vm3 = vcmp.lt.s32.totalorder %v1501_v12, 3  ;;  %vm377_vm4 = vcmp.lt.s32.totalorder %v1501_v12, 2  ;;  %v360_v11 = vshrl.u32 %v1331_v17, %v1499_v6 }
  0xb5   : > { %v372_v34 = vor.u32 %v371_v21, %v370_v8  ;;  %v375_v35 = vor.u32 %v374_v23, %v373_v14  ;;  %v363_v37 = vor.u32 %v362_v30, %v361_v18  ;;  %v366_v38 = vor.u32 %v365_v31, %v364_v20 }
  0xb6   : > { %v369_v39 = vor.u32 %v368_v33, %v367_v27 }
  0xb7   : > { %v385_v40 = vsel %vm379_vm1, %v372_v34, 920167782  ;;  %v389_v41 = vsel %vm379_vm1, %v375_v35, 1326507024  ;;  %v384_v42 = vsel %vm376_vm2, %v363_v37, %v366_v38  ;;  %v380_v19 = vsel %vm376_vm2, %v360_v11, %v363_v37 }
  0xb8   : > { %v386_v43 = vsel %vm378_vm3, %v369_v39, %v385_v40  ;;  %v388_v45 = vsel %vm376_vm2, %v366_v38, %v369_v39  ;;  %v390_v46 = vsel %vm378_vm3, %v372_v34, %v389_v41  ;;  %v381_v8 = vsel %vm379_vm1, %v369_v39, 2102212464 }
  0xb9   : > { %v387_v44 = vsel %vm377_vm4, %v384_v42, %v386_v43  ;;  %v391_v48 = vsel %vm377_vm4, %v388_v45, %v390_v46  ;;  %v382_v20 = vsel %vm378_vm3, %v366_v38, %v381_v8 }
  0xba   : > { %v417_v51 = vand.u32 65535, %v387_v44  ;;  %v418_v52 = vshrl.u32 %v387_v44, 16  ;;  %v395_v53 = vand.u32 65535, %v391_v48  ;;  %v396_v54 = vshrl.u32 %v391_v48, 16 }
  0xbb   : > { %v383_v17 = vsel %vm377_vm4, %v380_v19, %v382_v20  ;;  %vm487_vm4 = vweird.f32 %v1493_v32 }
  0xbc   : > { %v420_v55 = vmul.u32 %v418_v52, %v393_v47  ;;  %v421_v56 = vmul.u32 %v417_v51, %v394_v49  ;;  %v398_v57 = vmul.u32 %v396_v54, %v393_v47  ;;  %v399_v58 = vmul.u32 %v395_v53, %v394_v49 }
  0xbd   : > { %v419_v59 = vmul.u32 %v417_v51, %v393_v47  ;;  %v397_v61 = vmul.u32 %v395_v53, %v393_v47  ;;  %v422_v63 = vmul.u32 %v418_v52, %v394_v49  ;;  %v400_v1 = vmul.u32 %v396_v54, %v394_v49 }
  0xbe   : > { %v423_v60 = vshll.u32 %v420_v55, 16  ;;  %v401_v62 = vshll.u32 %v398_v57, 16  ;;  %v425_v2 = vshll.u32 %v421_v56, 16  ;;  %v403_v4 = vshll.u32 %v399_v58, 16 }
  0xbf   : > { %v424_v16 = vshrl.u32 %v420_v55, 16  ;;  %v402_v21 = vshrl.u32 %v398_v57, 16  ;;  %v426_v23 = vshrl.u32 %v421_v56, 16  ;;  %v404_v25 = vshrl.u32 %v399_v58, 16 }
  0xc0   : > { %vm427_vm5 = vc.u32 %v419_v59, %v423_v60  ;;  %v429_v3 = vadd.s32 %v423_v60, %v419_v59  ;;  %vm405_vm6 = vc.u32 %v397_v61, %v401_v62  ;;  %v407_v5 = vadd.s32 %v401_v62, %v397_v61 }
  0xc1   : > { %v428_v7 = vsel %vm427_vm5, 1, %v1328_v0  ;;  %v406_v9 = vsel %vm405_vm6, 1, %v1328_v0  ;;  %v437_v29 = vmul.u32 %v1509_v36, %v383_v17  ;;  %v859_v17 = vld [vmem:[%s1480_s28 + $0x70] sm:$0xff] }
  0xc2   : > { %v430_v10 = vadd.s32 %v428_v7, %v422_v63  ;;  %vm431_vm7 = vc.u32 %v429_v3, %v425_v2  ;;  %v408_v13 = vadd.s32 %v406_v9, %v400_v1  ;;  %vm409_vm8 = vc.u32 %v407_v5, %v403_v4 }
  0xc3   : > { %v432_v14 = vsel %vm431_vm7, 1, %v1328_v0  ;;  %v410_v15 = vsel %vm409_vm8, 1, %v1328_v0  ;;  %v433_v0 = vadd.s32 %v429_v3, %v425_v2 }
  0xc4   : > { %v434_v18 = vadd.s32 %v432_v14, %v430_v10  ;;  %v412_v22 = vadd.s32 %v410_v15, %v408_v13 }
  0xc6   : > { %v435_v24 = vadd.s32 %v434_v18, %v424_v16  ;;  %v413_v6 = vadd.s32 %v412_v22, %v402_v21 }
  0xc8   : > { %v436_v26 = vadd.s32 %v435_v24, %v426_v23  ;;  %v414_v27 = vadd.s32 %v413_v6, %v404_v25  ;;  %v876_v6 = vld [vmem:[%s1480_s28 + $0xf8] sm:$0xff] }
  0xc9   : > { %901 = vmatpush.msrb.mxu1 %v876_v6 }
  0xca   : > { %v440_v28 = vadd.s32 1, %v436_v26  ;;  %vm439_vm9 = vc.u32 %v414_v27, %v433_v0  ;;  %v438_v42 = vadd.s32 %v433_v0, %v414_v27  ;;  %v858_v27 = vld [vmem:[%s1480_s28 + $0x68] sm:$0xff] }
  0xcb   : > { %v874_v0 = vld [vmem:[%s1480_s28 + $0xe8] sm:$0xff] }
  0xcc   : > { %v441_v30 = vsel %vm439_vm9, %v440_v28, %v436_v26  ;;  %v875_v26 = vld [vmem:[%s1480_s28 + $0xf0] sm:$0xff]  ;;  %v857_v28 = vld [vmem:[%s1480_s28 + $0x60] sm:$0xff] }
  0xcd   : > { %v442_v31 = vadd.s32 %v441_v30, %v437_v29  ;;  %902 = vmatpush.msrb.mxu1 %v875_v26  ;;  %v873_v29 = vld [vmem:[%s1480_s28 + $0xe0] sm:$0xff]  ;;  %v856_v30 = vld [vmem:[%s1480_s28 + $0x58] sm:$0xff] }
  0xcf   : > { %v443_v33 = vadd.s32 536870912, %v442_v31  ;;  %903 = vmatpush.msrb.mxu1 %v874_v0 }
  0xd1   : > { %v444_v34 = vshrl.u32 %v443_v33, 30  ;;  %904 = vmatpush.msrb.mxu1 %v873_v29  ;;  %v855_v33 = vld [vmem:[%s1480_s28 + $0x50] sm:$0xff]  ;;  %v1166_v29 = vld [vmem:[%s332_s9] ss:$0 sm:$0xff]  ;;  %s1255_s9 = scalar_lea.hbm %s1646_s6, 16 }
  0xd3   : > { %v445_v35 = vshll.u32 %v444_v34, 30  ;;  %v468_v56 = vsub.s32 4, %v444_v34 }
  0xd5   : > { %v446_v37 = vsub.s32 %v442_v31, %v445_v35  ;;  %v469_v61 = vsel %vm346_vm12, %v468_v56, %v444_v34  ;;  %v872_v31 = vld [vmem:[%s1480_s28 + $0xd8] sm:$0xff]  ;;  %v871_v34 = vld [vmem:[%s1480_s28 + $0xd0] sm:$0xff]  ;;  %v854_v35 = vld [vmem:[%s1480_s28 + $0x48] sm:$0xff] }
  0xd6   : > { %v471_v1 = vsel %vm345_vm13, 0, %v469_v61  ;;  %905 = vmatpush.msrb.mxu1 %v872_v31  ;;  %v846_v56 = vld [vmem:[%s1480_s28 + $0x8] sm:$0xff] }
  0xd7   : > { %vm447_vm10 = vcmp.lt.s32.totalorder %v446_v37, 0  ;;  %v448_v38 = vsub.s32 0, %v446_v37  ;;  %v642_v7 = vadd.s32 3, %v471_v1  ;;  %v488_v11 = vand.u32 3, %v471_v1 }
  0xd8   : > { %906 = vmatpush.msrb.mxu1 %v871_v34 }
  0xd9   : > { %v449_v39 = vsel %vm447_vm10, %v448_v38, %v446_v37  ;;  %v643_v13 = vand.u32 3, %v642_v7  ;;  %vm489_vm14 = vcmp.lt.s32.totalorder %v488_v11, 2  ;;  %vm490_vm15 = vcmp.eq.s32.totalorder %v488_v11, 0  ;;  %v853_v38 = vld [vmem:[%s1480_s28 + $0x40] sm:$0xff] }
  0xda   : > { %v450_v40 = vclz %v449_v39  ;;  %vm493_vm3 = vcmp.eq.s32.totalorder %v488_v11, 2  ;;  %v869_v39 = vld [vmem:[%s1480_s28 + $0xc0] sm:$0xff] }
  0xdb   : > { %vm644_vm0 = vcmp.lt.s32.totalorder %v643_v13, 2  ;;  %vm645_vm1 = vcmp.eq.s32.totalorder %v643_v13, 0  ;;  %vm648_vm2 = vcmp.eq.s32.totalorder %v643_v13, 2 }
  0xdc   : > { %v1069_v41 = vadd.s32 4294967294, %v450_v40  ;;  %v852_v40 = vld [vmem:[%s1480_s28 + $0x38] sm:$0xff] }
  0xde   : > { %vm1070_vm11 = vcmp.lt.s32.totalorder %v1069_v41, 0 }
  0xdf   : > { %v453_v12 = vsel %vm1070_vm11, 0, %v1069_v41  ;;  %v868_v41 = vld [vmem:[%s1480_s28 + $0xb8] sm:$0xff] }
  0xe0   : > { %v454_v43 = vsub.s32 32, %v453_v12  ;;  %v458_v44 = vsub.s32 4294967266, %v453_v12  ;;  %v455_v45 = vshll.u32 %v446_v37, %v453_v12  ;;  %v870_v37 = vld [vmem:[%s1480_s28 + $0xc8] sm:$0xff]  ;;  %v851_v12 = vld [vmem:[%s1480_s28 + $0x30] sm:$0xff] }
  0xe1   : > { %907 = vmatpush.msrb.mxu1 %v870_v37 }
  0xe2   : > { %v456_v46 = vshrl.u32 %v438_v42, %v454_v43  ;;  %v459_v36 = vadd.s32 127, %v458_v44  ;;  %v867_v42 = vld [vmem:[%s1480_s28 + $0xb0] sm:$0xff]  ;;  %v850_v43 = vld [vmem:[%s1480_s28 + $0x28] sm:$0xff] }
  0xe3   : > { %908 = vmatpush.msrb.mxu1 %v869_v39  ;;  %v866_v44 = vld [vmem:[%s1480_s28 + $0xa8] sm:$0xff] }
  0xe4   : > { %v457_v47 = vor.u32 %v456_v46, %v455_v45  ;;  %v460_v48 = vshll.u32 %v459_v36, 23  ;;  %v849_v45 = vld [vmem:[%s1480_s28 + $0x20] sm:$0xff]  ;;  %v848_v36 = vld [vmem:[%s1480_s28 + $0x18] sm:$0xff] }
  0xe5   : > { %909 = vmatpush.msrb.mxu1 %v868_v41  ;;  %v865_v46 = vld [vmem:[%s1480_s28 + $0xa0] sm:$0xff] }
  0xe6   : > { %v461_v49 = vor.u32 4788187, %v460_v48  ;;  %v464_v52 = vcvt.s32.f32 %v457_v47  ;;  %v864_v47 = vld [vmem:[%s1480_s28 + $0x98] sm:$0xff]  ;;  %v797_v48 = vld [vmem:[%s1643_s3] sm:$0x3] }
  0xe7   : > { %910 = vmatpush.msrb.mxu1 %v867_v42 }
  0xe8   : > { %v462_v51 = vand.u32 2147483647, %v461_v49  ;;  %v847_v49 = vld [vmem:[%s1480_s28 + $0x10] sm:$0xff] }
  0xe9   : > { %911 = vmatpush.msrb.mxu1 %v866_v44 }
  0xea   : > { %v465_v53 = vmul.f32 %v464_v52, %v462_v51  ;;  %v863_v51 = vld [vmem:[%s1480_s28 + $0x90] sm:$0xff] }
  0xeb   : > { %912 = vmatpush.msrb.mxu1 %v865_v46 }
  0xec   : > { %v466_v54 = vxor.u32 2147483648, %v465_v53 }
  0xed   : > { %913 = vmatpush.msrb.mxu1 %v864_v47 }
  0xee   : > { %v467_v55 = vsel %vm346_vm12, %v466_v54, %v465_v53  ;;  %v799_v54 = vperm.slane %v797_v48, 0 }
  0xef   : > { %v470_v57 = vsel %vm345_vm13, %v1493_v32, %v467_v55  ;;  %v860_v32 = vld [vmem:[%s1480_s28 + $0x78] sm:$0xff]  ;;  %v800_v55 = vperm.slane %v797_v48, 1  ;;  %914 = vmatpush.msrb.mxu1 %v863_v51 }
  0xf0   : > { %v472_v58 = vmul.f32 %v470_v57, %v470_v57  ;;  %881 = vmatpush.msrb.mxu0 %v860_v32 }
  0xf2   : > { %v473_v59 = vmul.f32 -0.001358992, %v472_v58  ;;  %v480_v60 = vmul.f32 -0.00019511016, %v472_v58  ;;  %882 = vmatpush.msrb.mxu0 %v859_v17 }
  0xf4   : > { %v474_v62 = vadd.f32 0.041655596, %v473_v59  ;;  %v481_v63 = vadd.f32 0.008332121, %v480_v60  ;;  %883 = vmatpush.msrb.mxu0 %v858_v27 }
  0xf6   : > { %v475_v2 = vmul.f32 %v474_v62, %v472_v58  ;;  %v482_v3 = vmul.f32 %v481_v63, %v472_v58  ;;  %884 = vmatpush.msrb.mxu0 %v857_v28  ;;  %v845_v62 = vld [vmem:[%s1480_s28] sm:$0xff] }
  0xf7   : > { %v861_v63 = vld [vmem:[%s1480_s28 + $0x80] sm:$0xff] }
  0xf8   : > { %v476_v4 = vadd.f32 -0.4999988, %v475_v2  ;;  %v483_v5 = vadd.f32 -0.16666654, %v482_v3  ;;  %885 = vmatpush.msrb.mxu0 %v856_v30 }
  0xfa   : > { %v477_v8 = vmul.f32 %v476_v4, %v472_v58  ;;  %v484_v9 = vmul.f32 %v483_v5, %v472_v58  ;;  %886 = vmatpush.msrb.mxu0 %v855_v33 }
  0xfc   : > { %v478_v10 = vadd.f32 1.0, %v477_v8  ;;  %v485_v50 = vadd.f32 1.0, %v484_v9  ;;  %887 = vmatpush.msrb.mxu0 %v854_v35 }
  0xfe   : > { %v486_v14 = vmul.f32 %v485_v50, %v470_v57  ;;  %v494_v15 = vxor.u32 2147483648, %v478_v10  ;;  %888 = vmatpush.msrb.mxu0 %v853_v38  ;;  %v862_v57 = vld [vmem:[%s1480_s28 + $0x88] sm:$0xff]  ;;  %s935_s28 = scalar_lea.hbm %s1646_s6, %s1077_s16 }
  0xff   : > { %915 = vmatpush.msrb.mxu1 %v862_v57  ;;  %s939_s29 = sshll.u32 %s935_s28, 4  ;;  %s940_s29 = int_to_ptr.hbm [resolvable:$true] %s939_s29 }
 0x100   : > { %v491_v16 = vxor.u32 2147483648, %v486_v14  ;;  %v650_v19 = vsel %vm648_vm2, %v494_v15, %v486_v14  ;;  %v495_v21 = vsel %vm493_vm3, %v494_v15, %v486_v14  ;;  %889 = vmatpush.msrb.mxu0 %v852_v40  ;;  %s1249_s7 = sshra.s32 %s940_s29, 4  ;;  %s1250_s7 = int_to_ptr.hbm [resolvable:$true] %s1249_s7 }
 0x101   : > { %916 = vmatpush.msrb.mxu1 %v861_v63  ;;  %s1251_s8 = scalar_lea.hbm %s1250_s7, 8  ;;  %p1256_p12 = scmp.lt.s32.totalorder %s1250_s7, %s1646_s6 }
 0x102   : > { %v647_v18 = vsel %vm645_vm1, %v478_v10, %v491_v16  ;;  %v492_v20 = vsel %vm490_vm15, %v478_v10, %v491_v16  ;;  %890 = vmatpush.msrb.mxu0 %v851_v12  ;;  %p1252_p4 = scmp.ne.s32.totalorder %s1250_s7, %s1251_s8  ;;  %p1257_p13 = scmp.lt.s32.totalorder %s1255_s9, %s1251_s8 }
 0x103   : > { %v651_v22 = vsel %vm644_vm0, %v647_v18, %v650_v19  ;;  %v496_v23 = vsel %vm489_vm14, %v492_v20, %v495_v21 }
 0x104   : > { %v652_v24 = vsel %vm487_vm4, nan, %v651_v22  ;;  %v497_v25 = vsel %vm487_vm4, nan, %v496_v23  ;;  %891 = vmatpush.msrb.mxu0 %v850_v43  ;;  %p1253_p8 = pnand %p1252_p4, %p1451_p5  ;;  %p1258_p0 = por %p1257_p13, %p1256_p12 }
 0x105   : > { %733 = vmatmul.f32.vlgmr.msra.gmra.mxu0 %v652_v24  ;;  %753 = vmatmul.f32.vlgmr.msra.gmra.mxu1 %v652_v24 }
 0x106   : > { %773 = vmatmul.f32.vlgmr.msra.gmra.mxu2 %v497_v25  ;;  %793 = vmatmul.f32.vlgmr.msra.gmra.mxu3 %v497_v25  ;;  %p1254_p10 = pneg %p1253_p8 }
 0x107   : > { %892 = vmatpush.msrb.mxu0 %v849_v45 }
 0x108   : > { %p1259_p3 = pnand %p1258_p0, %p1254_p10 }
 0x109   : > { %893 = vmatpush.msrb.mxu0 %v848_v36 }
 0x10b   : > { %894 = vmatpush.msrb.mxu0 %v847_v49 }
 0x10d   : > { %895 = vmatpush.msrb.mxu0 %v846_v56 }
 0x10f   : > { %896 = vmatpush.msrb.mxu0 %v845_v62 }
 0x182   : > { %v734_v52 = vpop.f32.mrf.mxu0  ;;  %v754_v53 = vpop.f32.mrf.mxu1 }
 0x189   : > { %v774_v58 = vpop.f32.mrf.mxu2  ;;  %v794_v59 = vpop.f32.mrf.mxu3 }
 0x18a   : > { %v775_v60 = vadd.f32 %v774_v58, %v734_v52  ;;  %v795_v61 = vadd.f32 %v794_v59, %v754_v53 }
 0x18c   : > { %v803_v1 = vadd.f32 %v799_v54, %v775_v60  ;;  %v804_v2 = vadd.f32 %v800_v55, %v795_v61 }
 0x18e   : > { %v1074_v3 = vmul.f32 -1.442695, %v803_v1  ;;  %v1075_v4 = vmul.f32 -1.442695, %v804_v2 }
 0x190   : > { %1167 = vpow2.f32 %v1074_v3 }
 0x191   : > { %1169 = vpow2.f32 %v1075_v4 }
 0x196   : > { %v1168_v5 = vpop.eup %1167 }
 0x197   : > { %v1170_v7 = vpop.eup %1169  ;;  %v811_v8 = vadd.f32 1.0, %v1168_v5 }
 0x198   : > { %v812_v9 = vadd.f32 1.0, %v1170_v7 }
 0x199   : > { %1171 = vrcp.f32 %v811_v8  ;;  %v824_v15 = vand.u32 2147483648, %v811_v8  ;;  %v822_v19 = vand.u32 2147483647, %v811_v8  ;;  %vm818_vm7 = vweird.f32 %v811_v8 }
 0x19a   : > { %1173 = vrcp.f32 %v812_v9  ;;  %v839_v20 = vand.u32 2147483648, %v812_v9  ;;  %v837_v22 = vand.u32 2147483647, %v812_v9  ;;  %vm833_vm9 = vweird.f32 %v812_v9 }
 0x19b   : > { %v825_v24 = vor.u32 1.1754944e-38, %v824_v15  ;;  %vm823_vm10 = vcmp.eq.f32.partialorder %v822_v19, 8.507059e+37 }
 0x19c   : > { %v840_v6 = vor.u32 1.1754944e-38, %v839_v20  ;;  %vm838_vm12 = vcmp.eq.f32.partialorder %v837_v22, 8.507059e+37 }
 0x19f   : > { %v1172_v10 = vpop.eup %1171 }
 0x1a0   : > { %v1174_v50 = vpop.eup %1173  ;;  %v814_v11 = vmul.f32 %v1172_v10, %v811_v8  ;;  %vm819_vm5 = vweird.f32 %v1172_v10 }
 0x1a1   : > { %v829_v13 = vmul.f32 %v1174_v50, %v812_v9  ;;  %vm834_vm6 = vweird.f32 %v1174_v50  ;;  %vm820_vm8 = vmor %vm818_vm7, %vm819_vm5 }
 0x1a2   : > { %v815_v14 = vsub.f32 1.0, %v814_v11  ;;  %vm835_vm11 = vmor %vm833_vm9, %vm834_vm6 }
 0x1a3   : > { %v830_v16 = vsub.f32 1.0, %v829_v13 }
 0x1a4   : > { %v816_v18 = vmul.f32 %v1172_v10, %v815_v14 }
 0x1a5   : > { %v831_v21 = vmul.f32 %v1174_v50, %v830_v16 }
 0x1a6   : > { %v817_v23 = vadd.f32 %v1172_v10, %v816_v18 }
 0x1a7   : > { %v832_v25 = vadd.f32 %v1174_v50, %v831_v21 }
 0x1a8   : > { %v821_v32 = vsel %vm820_vm8, %v1172_v10, %v817_v23 }
 0x1a9   : > { %v826_v17 = vsel %vm823_vm10, %v825_v24, %v821_v32  ;;  %v836_v26 = vsel %vm835_vm11, %v1174_v50, %v832_v25 }
 0x1aa   : > { %v843_v27 = vmul.f32 %v826_v17, %v803_v1  ;;  %v841_v0 = vsel %vm838_vm12, %v840_v6, %v836_v26 }
 0x1ab   : > { %v844_v28 = vmul.f32 %v841_v0, %v804_v2 }
 0x1ac   : > { %897 = vmatmul.f32.vlgmr.msrb.gmra.mxu0 %v843_v27 }
 0x1ad   : > { %917 = vmatmul.f32.vlgmr.msrb.gmra.mxu1 %v844_v28 }
 0x229   : > { %v898_v30 = vpop.f32.mrf.mxu0 }
 0x22a   : > { %v899_v31 = vadd.f32 %v1166_v29, %v898_v30  ;;  %v918_v33 = vpop.f32.mrf.mxu1 }
 0x22c   : > { %v919_v34 = vadd.f32 %v918_v33, %v899_v31 }
 0x22e   : > { %921 = vst [vmem:[%s325_s2] sm:$0xff] %v919_v34 }
 0x22f   : > { %1262 = shalt.err (!%p1259_p3)
}
 0x230   : > { %1086 = dma.vmem_to_hbm [thread:$0]  (%p1451_p5), %s938_s26, 128, %s940_s29, %s923_s24  }
 0x231 PF: > { %s1666_s14 = sld [smem:[#allocation11_spill]]  ;;  %s951_s16 = sand.u32 1, %s1301_s21  }
 0x232   : > { %p1097_p7 = pnand %p1061_p11, %p1419_p6  ;;  %s952_s30 = scalar_lea.sflag [#allocation4], %s951_s16 }
 0x234   : > { %p1098_p9 = pneg %p1097_p7 }
 0x236   : > { %1296 = dma.done.wait (%p1098_p9), %s952_s30, 128  }
 0x237   : > { %1298 = vsyncadd (%p1098_p9), %s952_s30, 4294967168  ;;  %s23_s26 = sadd.s32 1, %s1666_s14   ;;  %s1667_s20 = sld [smem:[#allocation13_spill]] }
 0x238   : > { %p20_p2 = scmp.ge.s32.totalorder %s23_s26, 4   ;;  %s1668_s21 = smov %s1305_s22 }
 0x239   : > { %s1669_s22 = smov %s1309_s23  ;;  %s1670_s23 = smov %s1460_s10 }
 0x23a   : > { %s1671_s24 = smov %s1317_s25  ;;  %22 = sbr.rel (!%p20_p2) target bundleno = 9 (0x9), region = 100 }
 0x23d   : > { %s1672_s25 = smov %s1667_s20 }
 0x23f   :  { %958 = vsyncpa [#allocation3], 1 }
 0x240   :  { %960 = vsyncpa [#allocation3 + $0x1], 1 }
 0x241   :  { %961 = vsyncpa [#allocation6], 1 }
 0x242   :  { %963 = vsyncpa [#allocation6 + $0x1], 1 }
 0x243   :  { %964 = vsyncpa [#allocation4], 1 }
 0x244   :  { %966 = vsyncpa [#allocation4 + $0x1], 1 }

</bundles_post_ra>
